<compile_context>
chip_gen: v7x
topology: tpu7x:2x2x1
jax: 0.10.0
libtpu: 0.0.40
codegen_flags: <defaults>
</compile_context>

<pallas_src>
import math
import functools

import jax
import jax.numpy as jnp
from jax import lax
from jax.experimental import pallas as pl
from jax.experimental.pallas import tpu as pltpu


LANE = 128      # param-pack lane width
SUBLANE = 8     # row alignment for packed params


# ----------------------------------------------------------------------------
# config (small synthetic sizes consistent with the module)
# ----------------------------------------------------------------------------
class Opt:
    img_feature_size = 32
    lstm_hidden_size = 32          # must equal fusion_hidden_size for SF to apply
    fusion_hidden_size = 32
    fusion_multi_head = 4          # head_dim = 8
    fusion_ff_size = 64
    fusion_layer = 2
    fusion_dropout = 0.0           # dropout is identity at eval


# ----------------------------------------------------------------------------
# deterministic parameter init (synthetic, PyTorch-like bounds)
# ----------------------------------------------------------------------------
def _init_linear(key, fan_in, fan_out):
    kw, kb = jax.random.split(key)
    bound = 1.0 / math.sqrt(fan_in)
    w = jax.random.uniform(kw, (fan_in, fan_out), jnp.float32, -bound, bound)
    b = jax.random.uniform(kb, (1, fan_out), jnp.float32, -bound, bound)
    return w, b


def init_params(key, opt):
    keys = jax.random.split(key, 1 + opt.fusion_layer)
    H, FF = opt.fusion_hidden_size, opt.fusion_ff_size
    # feature_projection: kaiming_uniform_ weight, bias = 0
    bound = math.sqrt(6.0 / opt.img_feature_size)
    proj_w = jax.random.uniform(keys[0], (opt.img_feature_size, opt.lstm_hidden_size),
                                jnp.float32, -bound, bound)
    proj_b = jnp.zeros((1, opt.lstm_hidden_size), jnp.float32)
    layers = []
    for l in range(opt.fusion_layer):
        lk = jax.random.split(keys[1 + l], 6)
        wq, bq = _init_linear(lk[0], H, H)
        wk, bk = _init_linear(lk[1], H, H)
        wv, bv = _init_linear(lk[2], H, H)
        wm, bm = _init_linear(lk[3], H, H)
        w1, b1 = _init_linear(lk[4], H, FF)
        w2, b2 = _init_linear(lk[5], FF, H)
        layers.append(dict(
            wq=wq, bq=bq, wk=wk, bk=bk, wv=wv, bv=bv, wm=wm, bm=bm,
            w1=w1, b1=b1, w2=w2, b2=b2,
            g1=jnp.ones((1, H), jnp.float32), be1=jnp.zeros((1, H), jnp.float32),
            g2=jnp.ones((1, H), jnp.float32), be2=jnp.zeros((1, H), jnp.float32)))
    return dict(proj_w=proj_w, proj_b=proj_b, layers=layers)


_FULL_ORDER = ("wq", "bq", "wk", "bk", "wv", "bv", "wm", "bm",
               "w1", "b1", "w2", "b2", "g1", "be1", "g2", "be2")
_LAST_ORDER = ("wq", "bq", "wk", "bk")


# ----------------------------------------------------------------------------
# parameter packing: one contiguous (rows, 128) f32 buffer, 8-aligned row offsets
# ----------------------------------------------------------------------------
def _pad_rows(r):
    return ((r + SUBLANE - 1) // SUBLANE) * SUBLANE


def _param_layout(opt):
    """Static layout: name -> (row_offset, (rows, cols)).  Offsets are 8-aligned."""
    H, FF, F = opt.fusion_hidden_size, opt.fusion_ff_size, opt.img_feature_size
    L = opt.fusion_layer
    shapes = {"wq": (H, H), "bq": (1, H), "wk": (H, H), "bk": (1, H),
              "wv": (H, H), "bv": (1, H), "wm": (H, H), "bm": (1, H),
              "w1": (H, FF), "b1": (1, FF), "w2": (FF, H), "b2": (1, H),
              "g1": (1, H), "be1": (1, H), "g2": (1, H), "be2": (1, H)}
    entries = [("proj_w", (F, H)), ("proj_b", (1, H))]
    for l in range(L - 1):
        entries += [(f"L{l}.{n}", shapes[n]) for n in _FULL_ORDER]
    entries += [(f"L{L - 1}.{n}", shapes[n]) for n in _LAST_ORDER]
    layout, off = {}, 0
    for name, shp in entries:
        layout[name] = (off, shp)
        off += _pad_rows(shp[0])
    return layout, _pad_rows(off)


def pack_params(params, opt, layout, total_rows):
    buf = jnp.zeros((total_rows, LANE), jnp.float32)

    def put(b, name, arr):
        off, (r, c) = layout[name]
        return b.at[off:off + r, 0:c].set(arr.astype(jnp.float32))

    buf = put(buf, "proj_w", params["proj_w"])
    buf = put(buf, "proj_b", params["proj_b"])
    L = opt.fusion_layer
    for l in range(L - 1):
        for n in _FULL_ORDER:
            buf = put(buf, f"L{l}.{n}", params["layers"][l][n])
    for n in _LAST_ORDER:
        buf = put(buf, f"L{L - 1}.{n}", params["layers"][L - 1][n])
    return buf


# ----------------------------------------------------------------------------
# in-kernel helpers
# ----------------------------------------------------------------------------
def _layernorm(y, g, b, eps=1e-6):
    # MCAN LayerNorm: unbiased std (torch.std), eps added to std.
    H = y.shape[-1]
    mean = jnp.mean(y, axis=-1, keepdims=True)
    var = jnp.sum((y - mean) ** 2, axis=-1, keepdims=True) / (H - 1)
    return g * (y - mean) / (jnp.sqrt(var) + eps) + b


def _qkt(qh, kh):
    # q @ k^T without an explicit transpose: contract the last dims of both operands.
    return lax.dot_general(qh, kh, (((1,), (1,)), ((), ())),
                           preferred_element_type=jnp.float32)


# ----------------------------------------------------------------------------
# single fused kernel: projection -> mask -> (L-1) SF blocks -> masked scores
# ----------------------------------------------------------------------------
def _fused_kernel(img_ref, pack_ref, o_ref, att_ref, *,
                  layout, heads, num_full, bt, n_tok, hid):
    hd = hid // heads
    scale = 1.0 / math.sqrt(hd)

    def P(name):
        off, (r, c) = layout[name]
        return pack_ref[off:off + r, 0:c]          # static slice of the param pack

    # feature_projection over all bt*n_tok token rows (dialog rounds deduped).
    x = jnp.dot(img_ref[...], P("proj_w"),
                preferred_element_type=jnp.float32) + P("proj_b")      # (R, H)

    # make_mask on projected features: key j masked where sum_f |x[j,f]| == 0.
    # Computed as a single (1, R) row via ones(1,H) (.) |x| (exact: non-negative terms),
    # oriented along lanes so it broadcasts over the query (sublane) axis of the scores.
    ones_row = jnp.ones((1, hid), jnp.float32)
    key_sum = lax.dot_general(ones_row, jnp.abs(x), (((1,), (1,)), ((), ())),
                              preferred_element_type=jnp.float32)       # (1, R)
    mask_rows = [key_sum[:, b * n_tok:(b + 1) * n_tok] == 0.0
                 for b in range(bt)]                                    # each (1, N) bool

    # fusion_layer - 1 full self-fusion blocks; x stays resident on-chip.
    for l in range(num_full):
        pfx = f"L{l}."
        q = jnp.dot(x, P(pfx + "wq"), preferred_element_type=jnp.float32) + P(pfx + "bq")
        k = jnp.dot(x, P(pfx + "wk"), preferred_element_type=jnp.float32) + P(pfx + "bk")
        v = jnp.dot(x, P(pfx + "wv"), preferred_element_type=jnp.float32) + P(pfx + "bv")

        # Per-image / per-head attention core; head outputs land in the (R, H) VMEM
        # scratch at static lane offsets so the merge is ONE (R,H)@(H,H) matmul.
        for b in range(bt):
            r0 = b * n_tok
            for h in range(heads):
                c0 = h * hd
                s = _qkt(q[r0:r0 + n_tok, c0:c0 + hd],
                         k[r0:r0 + n_tok, c0:c0 + hd]) * scale           # (N, N)
                s = jnp.where(mask_rows[b], -1.0e9, s)                   # masked_fill
                p = jax.nn.softmax(s, axis=-1)
                att_ref[r0:r0 + n_tok, c0:c0 + hd] = jnp.dot(
                    p, v[r0:r0 + n_tok, c0:c0 + hd],
                    preferred_element_type=jnp.float32)

        merged = jnp.dot(att_ref[...], P(pfx + "wm"),
                         preferred_element_type=jnp.float32) + P(pfx + "bm")
        y = _layernorm(x + merged, P(pfx + "g1"), P(pfx + "be1"))
        ff = jnp.maximum(
            jnp.dot(y, P(pfx + "w1"), preferred_element_type=jnp.float32) + P(pfx + "b1"),
            0.0)
        ff = jnp.dot(ff, P(pfx + "w2"), preferred_element_type=jnp.float32) + P(pfx + "b2")
        x = _layernorm(y + ff, P(pfx + "g2"), P(pfx + "be2"))

    # Last layer: pre-softmax, mask-filled attention scores only (only_attention=True).
    # linear_v is computed and discarded in the reference path; skipped here.
    pfx = f"L{num_full}."
    q = jnp.dot(x, P(pfx + "wq"), preferred_element_type=jnp.float32) + P(pfx + "bq")
    k = jnp.dot(x, P(pfx + "wk"), preferred_element_type=jnp.float32) + P(pfx + "bk")
    for b in range(bt):
        r0 = b * n_tok
        parts = []
        for h in range(heads):
            c0 = h * hd
            s = _qkt(q[r0:r0 + n_tok, c0:c0 + hd],
                     k[r0:r0 + n_tok, c0:c0 + hd]) * scale
            parts.append(jnp.where(mask_rows[b], -1.0e9, s))
        # one lane-dense (N, heads*N) slab store per image instead of `heads` narrow stores
        o_ref[r0:r0 + n_tok, :] = jnp.concatenate(parts, axis=-1)


# ----------------------------------------------------------------------------
# wrapper: grid sizing, param packing, round broadcast / reshape as XLA glue
# ----------------------------------------------------------------------------
def _choose_bt(B, N):
    # Enough token rows per step to fill sublanes (target ~128 rows), but keep >= 2
    # grid steps when B >= 2 so both v7x TensorCores get work (costs one extra
    # ~0.35us step on single-TC v5e/v6e, negligible).
    bt = max(1, 128 // max(N, 1))
    if B >= 2:
        bt = min(bt, B // 2)
    bt = max(1, min(bt, B))
    while B % bt != 0:
        bt -= 1
    return bt


def image_encoder_only_attention(img_features, params, opt):
    B, N, F = img_features.shape
    H = opt.fusion_hidden_size
    heads = opt.fusion_multi_head
    L = opt.fusion_layer
    num_rounds = 10

    layout, total_rows = _param_layout(opt)
    pack = pack_params(params, opt, layout, total_rows)   # single (rows, 128) param buffer

    bt = _choose_bt(B, N)
    img2d = img_features.reshape(B * N, F).astype(jnp.float32)

    kernel = functools.partial(_fused_kernel, layout=layout, heads=heads,
                               num_full=L - 1, bt=bt, n_tok=N, hid=H)

    scores2d = pl.pallas_call(
        kernel,
        out_shape=jax.ShapeDtypeStruct((B * N, heads * N), jnp.float32),
        grid=(B // bt,),
        in_specs=[pl.BlockSpec((bt * N, F), lambda g: (g, 0)),          # image rows
                  pl.BlockSpec((total_rows, LANE), lambda g: (0, 0))],  # packed params
        out_specs=pl.BlockSpec((bt * N, heads * N), lambda g: (g, 0)),
        scratch_shapes=[pltpu.VMEM((bt * N, H), jnp.float32)],          # per-head att out
        compiler_params=pltpu.CompilerParams(dimension_semantics=("parallel",)),
    )(img2d, pack)

    # (B*N, heads*N) slab -> (B, heads, N, N), then broadcast the 10 bit-identical
    # dialog rounds (dedup: the rounds are exact copies of the projected features).
    scores = scores2d.reshape(B, N, heads, N).transpose(0, 2, 1, 3)
    out = jnp.broadcast_to(scores[:, None], (B, num_rounds, heads, N, N))
    return out.reshape(B * num_rounds, heads, N, N)


# ----------------------------------------------------------------------------
if __name__ == "__main__":
    opt = Opt()
    key = jax.random.PRNGKey(0)
    kp, kx = jax.random.split(key)
    params = init_params(kp, opt)

    B, N = 2, 8
    img_features = jax.random.normal(kx, (B, N, opt.img_feature_size), jnp.float32)
    # zero out the last region of each image so make_mask actually masks something
    img_features = img_features.at[:, -1, :].set(0.0)

    fwd = jax.jit(functools.partial(image_encoder_only_attention, opt=opt))
    out = jax.block_until_ready(fwd(img_features, params))
    assert out.shape == (B * 10, opt.fusion_multi_head, N, N), out.shape
    assert bool(jnp.all(jnp.isfinite(out)))
    print("KERNEL_OK")
</pallas_src>

<mosaic_0001>
module attributes {stable_mosaic.version = 11 : i64} {
  func.func @_fused_kernel(%arg0: i32, %arg1: memref<8x32xf32, #tpu.memory_space<vmem>>, %arg2: memref<424x128xf32, #tpu.memory_space<vmem>>, %arg3: memref<8x32xf32, #tpu.memory_space<vmem>>, %arg4: memref<8x32xf32, #tpu.memory_space<vmem>>) attributes {dimension_semantics = [#tpu.dimension_semantics<parallel>], iteration_bounds = array<i64: 2>, scalar_prefetch = 0 : i64, scratch_operands = 1 : i64, tpu.core_type = #tpu.core_type<tc>, window_params = [{transform_indices = @transform_0, window_bounds = array<i64: 8, 32>}, {pipeline_mode = #tpu.pipeline_mode<synchronous>, transform_indices = @transform_1, window_bounds = array<i64: 424, 128>}, {transform_indices = @transform_2, window_bounds = array<i64: 8, 32>}]} {
    %c0 = arith.constant 0 : index
    %c0_0 = arith.constant 0 : index
    %0 = vector.load %arg1[%c0, %c0_0] : memref<8x32xf32, #tpu.memory_space<vmem>>, vector<8x32xf32>
    %c0_1 = arith.constant 0 : index
    %c0_2 = arith.constant 0 : index
    %1 = vector.load %arg2[%c0_1, %c0_2] : memref<424x128xf32, #tpu.memory_space<vmem>>, vector<32x32xf32>
    %cst = arith.constant dense<0.000000e+00> : vector<8x32xf32>
    %2 = tpu.matmul %0, %1, %cst {dimension_numbers = #tpu.dot_dimension_numbers<[1], [0], [0], [1], [0, 0, 1, 1], [], []>} : vector<8x32xf32>, vector<32x32xf32>, vector<8x32xf32> -> vector<8x32xf32>
    %c32 = arith.constant 32 : index
    %c0_3 = arith.constant 0 : index
    %3 = vector.load %arg2[%c32, %c0_3] : memref<424x128xf32, #tpu.memory_space<vmem>>, vector<1x32xf32>
    %4 = vector.broadcast %3 : vector<1x32xf32> to vector<8x32xf32>
    %5 = arith.addf %2, %4 : vector<8x32xf32>
    %cst_4 = arith.constant 1.000000e+00 : f32
    %6 = vector.broadcast %cst_4 : f32 to vector<1x32xf32>
    %7 = math.absf %5 : vector<8x32xf32>
    %cst_5 = arith.constant dense<0.000000e+00> : vector<1x8xf32>
    %8 = tpu.matmul %6, %7, %cst_5 {dimension_numbers = #tpu.dot_dimension_numbers<[1], [1], [0], [0], [0, 0, 1, 0], [], []>} : vector<1x32xf32>, vector<8x32xf32>, vector<1x8xf32> -> vector<1x8xf32>
    %cst_6 = arith.constant 0.000000e+00 : f32
    %9 = vector.broadcast %cst_6 : f32 to vector<1x8xf32>
    %10 = arith.cmpf oeq, %8, %9 : vector<1x8xf32>
    %c40 = arith.constant 40 : index
    %c0_7 = arith.constant 0 : index
    %11 = vector.load %arg2[%c40, %c0_7] : memref<424x128xf32, #tpu.memory_space<vmem>>, vector<32x32xf32>
    %cst_8 = arith.constant dense<0.000000e+00> : vector<8x32xf32>
    %12 = tpu.matmul %5, %11, %cst_8 {dimension_numbers = #tpu.dot_dimension_numbers<[1], [0], [0], [1], [0, 0, 1, 1], [], []>} : vector<8x32xf32>, vector<32x32xf32>, vector<8x32xf32> -> vector<8x32xf32>
    %c72 = arith.constant 72 : index
    %c0_9 = arith.constant 0 : index
    %13 = vector.load %arg2[%c72, %c0_9] : memref<424x128xf32, #tpu.memory_space<vmem>>, vector<1x32xf32>
    %14 = vector.broadcast %13 : vector<1x32xf32> to vector<8x32xf32>
    %15 = arith.addf %12, %14 : vector<8x32xf32>
    %c80 = arith.constant 80 : index
    %c0_10 = arith.constant 0 : index
    %16 = vector.load %arg2[%c80, %c0_10] : memref<424x128xf32, #tpu.memory_space<vmem>>, vector<32x32xf32>
    %cst_11 = arith.constant dense<0.000000e+00> : vector<8x32xf32>
    %17 = tpu.matmul %5, %16, %cst_11 {dimension_numbers = #tpu.dot_dimension_numbers<[1], [0], [0], [1], [0, 0, 1, 1], [], []>} : vector<8x32xf32>, vector<32x32xf32>, vector<8x32xf32> -> vector<8x32xf32>
    %c112 = arith.constant 112 : index
    %c0_12 = arith.constant 0 : index
    %18 = vector.load %arg2[%c112, %c0_12] : memref<424x128xf32, #tpu.memory_space<vmem>>, vector<1x32xf32>
    %19 = vector.broadcast %18 : vector<1x32xf32> to vector<8x32xf32>
    %20 = arith.addf %17, %19 : vector<8x32xf32>
    %c120 = arith.constant 120 : index
    %c0_13 = arith.constant 0 : index
    %21 = vector.load %arg2[%c120, %c0_13] : memref<424x128xf32, #tpu.memory_space<vmem>>, vector<32x32xf32>
    %cst_14 = arith.constant dense<0.000000e+00> : vector<8x32xf32>
    %22 = tpu.matmul %5, %21, %cst_14 {dimension_numbers = #tpu.dot_dimension_numbers<[1], [0], [0], [1], [0, 0, 1, 1], [], []>} : vector<8x32xf32>, vector<32x32xf32>, vector<8x32xf32> -> vector<8x32xf32>
    %c152 = arith.constant 152 : index
    %c0_15 = arith.constant 0 : index
    %23 = vector.load %arg2[%c152, %c0_15] : memref<424x128xf32, #tpu.memory_space<vmem>>, vector<1x32xf32>
    %24 = vector.broadcast %23 : vector<1x32xf32> to vector<8x32xf32>
    %25 = arith.addf %22, %24 : vector<8x32xf32>
    %26 = vector.extract_strided_slice %15 {offsets = [0, 0], sizes = [8, 8], strides = [1, 1]} : vector<8x32xf32> to vector<8x8xf32>
    %27 = vector.extract_strided_slice %20 {offsets = [0, 0], sizes = [8, 8], strides = [1, 1]} : vector<8x32xf32> to vector<8x8xf32>
    %cst_16 = arith.constant dense<0.000000e+00> : vector<8x8xf32>
    %28 = tpu.matmul %26, %27, %cst_16 {dimension_numbers = #tpu.dot_dimension_numbers<[1], [1], [0], [0], [0, 0, 1, 0], [], []>} : vector<8x8xf32>, vector<8x8xf32>, vector<8x8xf32> -> vector<8x8xf32>
    %cst_17 = arith.constant 0.353553385 : f32
    %29 = vector.broadcast %cst_17 : f32 to vector<8x8xf32>
    %30 = arith.mulf %28, %29 : vector<8x8xf32>
    %cst_18 = arith.constant -1.000000e+09 : f32
    %31 = vector.shape_cast %10 : vector<1x8xi1> to vector<1x8xi1>
    %32 = vector.broadcast %31 : vector<1x8xi1> to vector<8x8xi1>
    %33 = vector.broadcast %cst_18 : f32 to vector<8x8xf32>
    %34 = arith.select %32, %33, %30 : vector<8x8xi1>, vector<8x8xf32>
    %cst_19 = arith.constant dense<0xFF800000> : vector<8xf32>
    %35 = vector.multi_reduction <maximumf>, %34, %cst_19 [1] : vector<8x8xf32> to vector<8xf32>
    %cst_20 = arith.constant 0xFF800000 : f32
    %36 = vector.broadcast %cst_20 : f32 to vector<8xf32>
    %37 = arith.maximumf %36, %35 : vector<8xf32>
    %38 = vector.shape_cast %37 : vector<8xf32> to vector<8x1xf32>
    %39 = vector.broadcast %38 : vector<8x1xf32> to vector<8x8xf32>
    %40 = arith.subf %34, %39 : vector<8x8xf32>
    %41 = math.exp %40 : vector<8x8xf32>
    %cst_21 = arith.constant dense<0.000000e+00> : vector<8xf32>
    %42 = vector.multi_reduction <add>, %41, %cst_21 [1] : vector<8x8xf32> to vector<8xf32>
    %43 = vector.shape_cast %42 : vector<8xf32> to vector<8x1xf32>
    %44 = vector.broadcast %43 : vector<8x1xf32> to vector<8x8xf32>
    %45 = arith.divf %41, %44 : vector<8x8xf32>
    %46 = vector.extract_strided_slice %25 {offsets = [0, 0], sizes = [8, 8], strides = [1, 1]} : vector<8x32xf32> to vector<8x8xf32>
    %cst_22 = arith.constant dense<0.000000e+00> : vector<8x8xf32>
    %47 = tpu.matmul %45, %46, %cst_22 {dimension_numbers = #tpu.dot_dimension_numbers<[1], [0], [0], [1], [0, 0, 1, 1], [], []>} : vector<8x8xf32>, vector<8x8xf32>, vector<8x8xf32> -> vector<8x8xf32>
    %c0_23 = arith.constant 0 : index
    %c0_24 = arith.constant 0 : index
    %48 = vector.load %arg4[%c0_23, %c0_24] : memref<8x32xf32, #tpu.memory_space<vmem>>, vector<8x8xf32>
    tpu.vector_store %arg4[%c0_23, %c0_24], %47 {strides = array<i32>} : memref<8x32xf32, #tpu.memory_space<vmem>>, vector<8x8xf32>,
    %49 = vector.extract_strided_slice %15 {offsets = [0, 8], sizes = [8, 8], strides = [1, 1]} : vector<8x32xf32> to vector<8x8xf32>
    %50 = vector.extract_strided_slice %20 {offsets = [0, 8], sizes = [8, 8], strides = [1, 1]} : vector<8x32xf32> to vector<8x8xf32>
    %cst_25 = arith.constant dense<0.000000e+00> : vector<8x8xf32>
    %51 = tpu.matmul %49, %50, %cst_25 {dimension_numbers = #tpu.dot_dimension_numbers<[1], [1], [0], [0], [0, 0, 1, 0], [], []>} : vector<8x8xf32>, vector<8x8xf32>, vector<8x8xf32> -> vector<8x8xf32>
    %cst_26 = arith.constant 0.353553385 : f32
    %52 = vector.broadcast %cst_26 : f32 to vector<8x8xf32>
    %53 = arith.mulf %51, %52 : vector<8x8xf32>
    %cst_27 = arith.constant -1.000000e+09 : f32
    %54 = vector.shape_cast %10 : vector<1x8xi1> to vector<1x8xi1>
    %55 = vector.broadcast %54 : vector<1x8xi1> to vector<8x8xi1>
    %56 = vector.broadcast %cst_27 : f32 to vector<8x8xf32>
    %57 = arith.select %55, %56, %53 : vector<8x8xi1>, vector<8x8xf32>
    %cst_28 = arith.constant dense<0xFF800000> : vector<8xf32>
    %58 = vector.multi_reduction <maximumf>, %57, %cst_28 [1] : vector<8x8xf32> to vector<8xf32>
    %cst_29 = arith.constant 0xFF800000 : f32
    %59 = vector.broadcast %cst_29 : f32 to vector<8xf32>
    %60 = arith.maximumf %59, %58 : vector<8xf32>
    %61 = vector.shape_cast %60 : vector<8xf32> to vector<8x1xf32>
    %62 = vector.broadcast %61 : vector<8x1xf32> to vector<8x8xf32>
    %63 = arith.subf %57, %62 : vector<8x8xf32>
    %64 = math.exp %63 : vector<8x8xf32>
    %cst_30 = arith.constant dense<0.000000e+00> : vector<8xf32>
    %65 = vector.multi_reduction <add>, %64, %cst_30 [1] : vector<8x8xf32> to vector<8xf32>
    %66 = vector.shape_cast %65 : vector<8xf32> to vector<8x1xf32>
    %67 = vector.broadcast %66 : vector<8x1xf32> to vector<8x8xf32>
    %68 = arith.divf %64, %67 : vector<8x8xf32>
    %69 = vector.extract_strided_slice %25 {offsets = [0, 8], sizes = [8, 8], strides = [1, 1]} : vector<8x32xf32> to vector<8x8xf32>
    %cst_31 = arith.constant dense<0.000000e+00> : vector<8x8xf32>
    %70 = tpu.matmul %68, %69, %cst_31 {dimension_numbers = #tpu.dot_dimension_numbers<[1], [0], [0], [1], [0, 0, 1, 1], [], []>} : vector<8x8xf32>, vector<8x8xf32>, vector<8x8xf32> -> vector<8x8xf32>
    %c0_32 = arith.constant 0 : index
    %c8 = arith.constant 8 : index
    %71 = vector.load %arg4[%c0_32, %c8] : memref<8x32xf32, #tpu.memory_space<vmem>>, vector<8x8xf32>
    tpu.vector_store %arg4[%c0_32, %c8], %70 {strides = array<i32>} : memref<8x32xf32, #tpu.memory_space<vmem>>, vector<8x8xf32>,
    %72 = vector.extract_strided_slice %15 {offsets = [0, 16], sizes = [8, 8], strides = [1, 1]} : vector<8x32xf32> to vector<8x8xf32>
    %73 = vector.extract_strided_slice %20 {offsets = [0, 16], sizes = [8, 8], strides = [1, 1]} : vector<8x32xf32> to vector<8x8xf32>
    %cst_33 = arith.constant dense<0.000000e+00> : vector<8x8xf32>
    %74 = tpu.matmul %72, %73, %cst_33 {dimension_numbers = #tpu.dot_dimension_numbers<[1], [1], [0], [0], [0, 0, 1, 0], [], []>} : vector<8x8xf32>, vector<8x8xf32>, vector<8x8xf32> -> vector<8x8xf32>
    %cst_34 = arith.constant 0.353553385 : f32
    %75 = vector.broadcast %cst_34 : f32 to vector<8x8xf32>
    %76 = arith.mulf %74, %75 : vector<8x8xf32>
    %cst_35 = arith.constant -1.000000e+09 : f32
    %77 = vector.shape_cast %10 : vector<1x8xi1> to vector<1x8xi1>
    %78 = vector.broadcast %77 : vector<1x8xi1> to vector<8x8xi1>
    %79 = vector.broadcast %cst_35 : f32 to vector<8x8xf32>
    %80 = arith.select %78, %79, %76 : vector<8x8xi1>, vector<8x8xf32>
    %cst_36 = arith.constant dense<0xFF800000> : vector<8xf32>
    %81 = vector.multi_reduction <maximumf>, %80, %cst_36 [1] : vector<8x8xf32> to vector<8xf32>
    %cst_37 = arith.constant 0xFF800000 : f32
    %82 = vector.broadcast %cst_37 : f32 to vector<8xf32>
    %83 = arith.maximumf %82, %81 : vector<8xf32>
    %84 = vector.shape_cast %83 : vector<8xf32> to vector<8x1xf32>
    %85 = vector.broadcast %84 : vector<8x1xf32> to vector<8x8xf32>
    %86 = arith.subf %80, %85 : vector<8x8xf32>
    %87 = math.exp %86 : vector<8x8xf32>
    %cst_38 = arith.constant dense<0.000000e+00> : vector<8xf32>
    %88 = vector.multi_reduction <add>, %87, %cst_38 [1] : vector<8x8xf32> to vector<8xf32>
    %89 = vector.shape_cast %88 : vector<8xf32> to vector<8x1xf32>
    %90 = vector.broadcast %89 : vector<8x1xf32> to vector<8x8xf32>
    %91 = arith.divf %87, %90 : vector<8x8xf32>
    %92 = vector.extract_strided_slice %25 {offsets = [0, 16], sizes = [8, 8], strides = [1, 1]} : vector<8x32xf32> to vector<8x8xf32>
    %cst_39 = arith.constant dense<0.000000e+00> : vector<8x8xf32>
    %93 = tpu.matmul %91, %92, %cst_39 {dimension_numbers = #tpu.dot_dimension_numbers<[1], [0], [0], [1], [0, 0, 1, 1], [], []>} : vector<8x8xf32>, vector<8x8xf32>, vector<8x8xf32> -> vector<8x8xf32>
    %c0_40 = arith.constant 0 : index
    %c16 = arith.constant 16 : index
    %94 = vector.load %arg4[%c0_40, %c16] : memref<8x32xf32, #tpu.memory_space<vmem>>, vector<8x8xf32>
    tpu.vector_store %arg4[%c0_40, %c16], %93 {strides = array<i32>} : memref<8x32xf32, #tpu.memory_space<vmem>>, vector<8x8xf32>,
    %95 = vector.extract_strided_slice %15 {offsets = [0, 24], sizes = [8, 8], strides = [1, 1]} : vector<8x32xf32> to vector<8x8xf32>
    %96 = vector.extract_strided_slice %20 {offsets = [0, 24], sizes = [8, 8], strides = [1, 1]} : vector<8x32xf32> to vector<8x8xf32>
    %cst_41 = arith.constant dense<0.000000e+00> : vector<8x8xf32>
    %97 = tpu.matmul %95, %96, %cst_41 {dimension_numbers = #tpu.dot_dimension_numbers<[1], [1], [0], [0], [0, 0, 1, 0], [], []>} : vector<8x8xf32>, vector<8x8xf32>, vector<8x8xf32> -> vector<8x8xf32>
    %cst_42 = arith.constant 0.353553385 : f32
    %98 = vector.broadcast %cst_42 : f32 to vector<8x8xf32>
    %99 = arith.mulf %97, %98 : vector<8x8xf32>
    %cst_43 = arith.constant -1.000000e+09 : f32
    %100 = vector.shape_cast %10 : vector<1x8xi1> to vector<1x8xi1>
    %101 = vector.broadcast %100 : vector<1x8xi1> to vector<8x8xi1>
    %102 = vector.broadcast %cst_43 : f32 to vector<8x8xf32>
    %103 = arith.select %101, %102, %99 : vector<8x8xi1>, vector<8x8xf32>
    %cst_44 = arith.constant dense<0xFF800000> : vector<8xf32>
    %104 = vector.multi_reduction <maximumf>, %103, %cst_44 [1] : vector<8x8xf32> to vector<8xf32>
    %cst_45 = arith.constant 0xFF800000 : f32
    %105 = vector.broadcast %cst_45 : f32 to vector<8xf32>
    %106 = arith.maximumf %105, %104 : vector<8xf32>
    %107 = vector.shape_cast %106 : vector<8xf32> to vector<8x1xf32>
    %108 = vector.broadcast %107 : vector<8x1xf32> to vector<8x8xf32>
    %109 = arith.subf %103, %108 : vector<8x8xf32>
    %110 = math.exp %109 : vector<8x8xf32>
    %cst_46 = arith.constant dense<0.000000e+00> : vector<8xf32>
    %111 = vector.multi_reduction <add>, %110, %cst_46 [1] : vector<8x8xf32> to vector<8xf32>
    %112 = vector.shape_cast %111 : vector<8xf32> to vector<8x1xf32>
    %113 = vector.broadcast %112 : vector<8x1xf32> to vector<8x8xf32>
    %114 = arith.divf %110, %113 : vector<8x8xf32>
    %115 = vector.extract_strided_slice %25 {offsets = [0, 24], sizes = [8, 8], strides = [1, 1]} : vector<8x32xf32> to vector<8x8xf32>
    %cst_47 = arith.constant dense<0.000000e+00> : vector<8x8xf32>
    %116 = tpu.matmul %114, %115, %cst_47 {dimension_numbers = #tpu.dot_dimension_numbers<[1], [0], [0], [1], [0, 0, 1, 1], [], []>} : vector<8x8xf32>, vector<8x8xf32>, vector<8x8xf32> -> vector<8x8xf32>
    %c0_48 = arith.constant 0 : index
    %c24 = arith.constant 24 : index
    %117 = vector.load %arg4[%c0_48, %c24] : memref<8x32xf32, #tpu.memory_space<vmem>>, vector<8x8xf32>
    tpu.vector_store %arg4[%c0_48, %c24], %116 {strides = array<i32>} : memref<8x32xf32, #tpu.memory_space<vmem>>, vector<8x8xf32>,
    %c0_49 = arith.constant 0 : index
    %c0_50 = arith.constant 0 : index
    %118 = vector.load %arg4[%c0_49, %c0_50] : memref<8x32xf32, #tpu.memory_space<vmem>>, vector<8x32xf32>
    %c160 = arith.constant 160 : index
    %c0_51 = arith.constant 0 : index
    %119 = vector.load %arg2[%c160, %c0_51] : memref<424x128xf32, #tpu.memory_space<vmem>>, vector<32x32xf32>
    %cst_52 = arith.constant dense<0.000000e+00> : vector<8x32xf32>
    %120 = tpu.matmul %118, %119, %cst_52 {dimension_numbers = #tpu.dot_dimension_numbers<[1], [0], [0], [1], [0, 0, 1, 1], [], []>} : vector<8x32xf32>, vector<32x32xf32>, vector<8x32xf32> -> vector<8x32xf32>
    %c192 = arith.constant 192 : index
    %c0_53 = arith.constant 0 : index
    %121 = vector.load %arg2[%c192, %c0_53] : memref<424x128xf32, #tpu.memory_space<vmem>>, vector<1x32xf32>
    %122 = vector.broadcast %121 : vector<1x32xf32> to vector<8x32xf32>
    %123 = arith.addf %120, %122 : vector<8x32xf32>
    %124 = arith.addf %5, %123 : vector<8x32xf32>
    %c312 = arith.constant 312 : index
    %c0_54 = arith.constant 0 : index
    %125 = vector.load %arg2[%c312, %c0_54] : memref<424x128xf32, #tpu.memory_space<vmem>>, vector<1x32xf32>
    %c320 = arith.constant 320 : index
    %c0_55 = arith.constant 0 : index
    %126 = vector.load %arg2[%c320, %c0_55] : memref<424x128xf32, #tpu.memory_space<vmem>>, vector<1x32xf32>
    %cst_56 = arith.constant dense<0.000000e+00> : vector<8xf32>
    %127 = vector.multi_reduction <add>, %124, %cst_56 [1] : vector<8x32xf32> to vector<8xf32>
    %128 = vector.shape_cast %127 : vector<8xf32> to vector<8x1xf32>
    %cst_57 = arith.constant 3.200000e+01 : f32
    %129 = vector.broadcast %cst_57 : f32 to vector<8x1xf32>
    %130 = arith.divf %128, %129 : vector<8x1xf32>
    %131 = vector.broadcast %130 : vector<8x1xf32> to vector<8x32xf32>
    %132 = arith.subf %124, %131 : vector<8x32xf32>
    %133 = arith.mulf %132, %132 : vector<8x32xf32>
    %cst_58 = arith.constant dense<0.000000e+00> : vector<8xf32>
    %134 = vector.multi_reduction <add>, %133, %cst_58 [1] : vector<8x32xf32> to vector<8xf32>
    %135 = vector.shape_cast %134 : vector<8xf32> to vector<8x1xf32>
    %cst_59 = arith.constant 3.100000e+01 : f32
    %136 = vector.broadcast %cst_59 : f32 to vector<8x1xf32>
    %137 = arith.divf %135, %136 : vector<8x1xf32>
    %138 = vector.broadcast %130 : vector<8x1xf32> to vector<8x32xf32>
    %139 = arith.subf %124, %138 : vector<8x32xf32>
    %140 = vector.broadcast %125 : vector<1x32xf32> to vector<8x32xf32>
    %141 = arith.mulf %140, %139 : vector<8x32xf32>
    %142 = math.sqrt %137 : vector<8x1xf32>
    %cst_60 = arith.constant 9.99999997E-7 : f32
    %143 = vector.broadcast %cst_60 : f32 to vector<8x1xf32>
    %144 = arith.addf %142, %143 : vector<8x1xf32>
    %145 = vector.broadcast %144 : vector<8x1xf32> to vector<8x32xf32>
    %146 = arith.divf %141, %145 : vector<8x32xf32>
    %147 = vector.broadcast %126 : vector<1x32xf32> to vector<8x32xf32>
    %148 = arith.addf %146, %147 : vector<8x32xf32>
    %c200 = arith.constant 200 : index
    %c0_61 = arith.constant 0 : index
    %149 = vector.load %arg2[%c200, %c0_61] : memref<424x128xf32, #tpu.memory_space<vmem>>, vector<32x64xf32>
    %cst_62 = arith.constant dense<0.000000e+00> : vector<8x64xf32>
    %150 = tpu.matmul %148, %149, %cst_62 {dimension_numbers = #tpu.dot_dimension_numbers<[1], [0], [0], [1], [0, 0, 1, 1], [], []>} : vector<8x32xf32>, vector<32x64xf32>, vector<8x64xf32> -> vector<8x64xf32>
    %c232 = arith.constant 232 : index
    %c0_63 = arith.constant 0 : index
    %151 = vector.load %arg2[%c232, %c0_63] : memref<424x128xf32, #tpu.memory_space<vmem>>, vector<1x64xf32>
    %152 = vector.broadcast %151 : vector<1x64xf32> to vector<8x64xf32>
    %153 = arith.addf %150, %152 : vector<8x64xf32>
    %cst_64 = arith.constant 0.000000e+00 : f32
    %154 = vector.broadcast %cst_64 : f32 to vector<8x64xf32>
    %155 = arith.maximumf %153, %154 : vector<8x64xf32>
    %c240 = arith.constant 240 : index
    %c0_65 = arith.constant 0 : index
    %156 = vector.load %arg2[%c240, %c0_65] : memref<424x128xf32, #tpu.memory_space<vmem>>, vector<64x32xf32>
    %cst_66 = arith.constant dense<0.000000e+00> : vector<8x32xf32>
    %157 = tpu.matmul %155, %156, %cst_66 {dimension_numbers = #tpu.dot_dimension_numbers<[1], [0], [0], [1], [0, 0, 1, 1], [], []>} : vector<8x64xf32>, vector<64x32xf32>, vector<8x32xf32> -> vector<8x32xf32>
    %c304 = arith.constant 304 : index
    %c0_67 = arith.constant 0 : index
    %158 = vector.load %arg2[%c304, %c0_67] : memref<424x128xf32, #tpu.memory_space<vmem>>, vector<1x32xf32>
    %159 = vector.broadcast %158 : vector<1x32xf32> to vector<8x32xf32>
    %160 = arith.addf %157, %159 : vector<8x32xf32>
    %161 = arith.addf %148, %160 : vector<8x32xf32>
    %c328 = arith.constant 328 : index
    %c0_68 = arith.constant 0 : index
    %162 = vector.load %arg2[%c328, %c0_68] : memref<424x128xf32, #tpu.memory_space<vmem>>, vector<1x32xf32>
    %c336 = arith.constant 336 : index
    %c0_69 = arith.constant 0 : index
    %163 = vector.load %arg2[%c336, %c0_69] : memref<424x128xf32, #tpu.memory_space<vmem>>, vector<1x32xf32>
    %cst_70 = arith.constant dense<0.000000e+00> : vector<8xf32>
    %164 = vector.multi_reduction <add>, %161, %cst_70 [1] : vector<8x32xf32> to vector<8xf32>
    %165 = vector.shape_cast %164 : vector<8xf32> to vector<8x1xf32>
    %cst_71 = arith.constant 3.200000e+01 : f32
    %166 = vector.broadcast %cst_71 : f32 to vector<8x1xf32>
    %167 = arith.divf %165, %166 : vector<8x1xf32>
    %168 = vector.broadcast %167 : vector<8x1xf32> to vector<8x32xf32>
    %169 = arith.subf %161, %168 : vector<8x32xf32>
    %170 = arith.mulf %169, %169 : vector<8x32xf32>
    %cst_72 = arith.constant dense<0.000000e+00> : vector<8xf32>
    %171 = vector.multi_reduction <add>, %170, %cst_72 [1] : vector<8x32xf32> to vector<8xf32>
    %172 = vector.shape_cast %171 : vector<8xf32> to vector<8x1xf32>
    %cst_73 = arith.constant 3.100000e+01 : f32
    %173 = vector.broadcast %cst_73 : f32 to vector<8x1xf32>
    %174 = arith.divf %172, %173 : vector<8x1xf32>
    %175 = vector.broadcast %167 : vector<8x1xf32> to vector<8x32xf32>
    %176 = arith.subf %161, %175 : vector<8x32xf32>
    %177 = vector.broadcast %162 : vector<1x32xf32> to vector<8x32xf32>
    %178 = arith.mulf %177, %176 : vector<8x32xf32>
    %179 = math.sqrt %174 : vector<8x1xf32>
    %cst_74 = arith.constant 9.99999997E-7 : f32
    %180 = vector.broadcast %cst_74 : f32 to vector<8x1xf32>
    %181 = arith.addf %179, %180 : vector<8x1xf32>
    %182 = vector.broadcast %181 : vector<8x1xf32> to vector<8x32xf32>
    %183 = arith.divf %178, %182 : vector<8x32xf32>
    %184 = vector.broadcast %163 : vector<1x32xf32> to vector<8x32xf32>
    %185 = arith.addf %183, %184 : vector<8x32xf32>
    %c344 = arith.constant 344 : index
    %c0_75 = arith.constant 0 : index
    %186 = vector.load %arg2[%c344, %c0_75] : memref<424x128xf32, #tpu.memory_space<vmem>>, vector<32x32xf32>
    %cst_76 = arith.constant dense<0.000000e+00> : vector<8x32xf32>
    %187 = tpu.matmul %185, %186, %cst_76 {dimension_numbers = #tpu.dot_dimension_numbers<[1], [0], [0], [1], [0, 0, 1, 1], [], []>} : vector<8x32xf32>, vector<32x32xf32>, vector<8x32xf32> -> vector<8x32xf32>
    %c376 = arith.constant 376 : index
    %c0_77 = arith.constant 0 : index
    %188 = vector.load %arg2[%c376, %c0_77] : memref<424x128xf32, #tpu.memory_space<vmem>>, vector<1x32xf32>
    %189 = vector.broadcast %188 : vector<1x32xf32> to vector<8x32xf32>
    %190 = arith.addf %187, %189 : vector<8x32xf32>
    %c384 = arith.constant 384 : index
    %c0_78 = arith.constant 0 : index
    %191 = vector.load %arg2[%c384, %c0_78] : memref<424x128xf32, #tpu.memory_space<vmem>>, vector<32x32xf32>
    %cst_79 = arith.constant dense<0.000000e+00> : vector<8x32xf32>
    %192 = tpu.matmul %185, %191, %cst_79 {dimension_numbers = #tpu.dot_dimension_numbers<[1], [0], [0], [1], [0, 0, 1, 1], [], []>} : vector<8x32xf32>, vector<32x32xf32>, vector<8x32xf32> -> vector<8x32xf32>
    %c416 = arith.constant 416 : index
    %c0_80 = arith.constant 0 : index
    %193 = vector.load %arg2[%c416, %c0_80] : memref<424x128xf32, #tpu.memory_space<vmem>>, vector<1x32xf32>
    %194 = vector.broadcast %193 : vector<1x32xf32> to vector<8x32xf32>
    %195 = arith.addf %192, %194 : vector<8x32xf32>
    %196 = vector.extract_strided_slice %190 {offsets = [0, 0], sizes = [8, 8], strides = [1, 1]} : vector<8x32xf32> to vector<8x8xf32>
    %197 = vector.extract_strided_slice %195 {offsets = [0, 0], sizes = [8, 8], strides = [1, 1]} : vector<8x32xf32> to vector<8x8xf32>
    %cst_81 = arith.constant dense<0.000000e+00> : vector<8x8xf32>
    %198 = tpu.matmul %196, %197, %cst_81 {dimension_numbers = #tpu.dot_dimension_numbers<[1], [1], [0], [0], [0, 0, 1, 0], [], []>} : vector<8x8xf32>, vector<8x8xf32>, vector<8x8xf32> -> vector<8x8xf32>
    %cst_82 = arith.constant 0.353553385 : f32
    %199 = vector.broadcast %cst_82 : f32 to vector<8x8xf32>
    %200 = arith.mulf %198, %199 : vector<8x8xf32>
    %cst_83 = arith.constant -1.000000e+09 : f32
    %201 = vector.shape_cast %10 : vector<1x8xi1> to vector<1x8xi1>
    %202 = vector.broadcast %201 : vector<1x8xi1> to vector<8x8xi1>
    %203 = vector.broadcast %cst_83 : f32 to vector<8x8xf32>
    %204 = arith.select %202, %203, %200 : vector<8x8xi1>, vector<8x8xf32>
    %205 = vector.extract_strided_slice %190 {offsets = [0, 8], sizes = [8, 8], strides = [1, 1]} : vector<8x32xf32> to vector<8x8xf32>
    %206 = vector.extract_strided_slice %195 {offsets = [0, 8], sizes = [8, 8], strides = [1, 1]} : vector<8x32xf32> to vector<8x8xf32>
    %cst_84 = arith.constant dense<0.000000e+00> : vector<8x8xf32>
    %207 = tpu.matmul %205, %206, %cst_84 {dimension_numbers = #tpu.dot_dimension_numbers<[1], [1], [0], [0], [0, 0, 1, 0], [], []>} : vector<8x8xf32>, vector<8x8xf32>, vector<8x8xf32> -> vector<8x8xf32>
    %cst_85 = arith.constant 0.353553385 : f32
    %208 = vector.broadcast %cst_85 : f32 to vector<8x8xf32>
    %209 = arith.mulf %207, %208 : vector<8x8xf32>
    %cst_86 = arith.constant -1.000000e+09 : f32
    %210 = vector.shape_cast %10 : vector<1x8xi1> to vector<1x8xi1>
    %211 = vector.broadcast %210 : vector<1x8xi1> to vector<8x8xi1>
    %212 = vector.broadcast %cst_86 : f32 to vector<8x8xf32>
    %213 = arith.select %211, %212, %209 : vector<8x8xi1>, vector<8x8xf32>
    %214 = vector.extract_strided_slice %190 {offsets = [0, 16], sizes = [8, 8], strides = [1, 1]} : vector<8x32xf32> to vector<8x8xf32>
    %215 = vector.extract_strided_slice %195 {offsets = [0, 16], sizes = [8, 8], strides = [1, 1]} : vector<8x32xf32> to vector<8x8xf32>
    %cst_87 = arith.constant dense<0.000000e+00> : vector<8x8xf32>
    %216 = tpu.matmul %214, %215, %cst_87 {dimension_numbers = #tpu.dot_dimension_numbers<[1], [1], [0], [0], [0, 0, 1, 0], [], []>} : vector<8x8xf32>, vector<8x8xf32>, vector<8x8xf32> -> vector<8x8xf32>
    %cst_88 = arith.constant 0.353553385 : f32
    %217 = vector.broadcast %cst_88 : f32 to vector<8x8xf32>
    %218 = arith.mulf %216, %217 : vector<8x8xf32>
    %cst_89 = arith.constant -1.000000e+09 : f32
    %219 = vector.shape_cast %10 : vector<1x8xi1> to vector<1x8xi1>
    %220 = vector.broadcast %219 : vector<1x8xi1> to vector<8x8xi1>
    %221 = vector.broadcast %cst_89 : f32 to vector<8x8xf32>
    %222 = arith.select %220, %221, %218 : vector<8x8xi1>, vector<8x8xf32>
    %223 = vector.extract_strided_slice %190 {offsets = [0, 24], sizes = [8, 8], strides = [1, 1]} : vector<8x32xf32> to vector<8x8xf32>
    %224 = vector.extract_strided_slice %195 {offsets = [0, 24], sizes = [8, 8], strides = [1, 1]} : vector<8x32xf32> to vector<8x8xf32>
    %cst_90 = arith.constant dense<0.000000e+00> : vector<8x8xf32>
    %225 = tpu.matmul %223, %224, %cst_90 {dimension_numbers = #tpu.dot_dimension_numbers<[1], [1], [0], [0], [0, 0, 1, 0], [], []>} : vector<8x8xf32>, vector<8x8xf32>, vector<8x8xf32> -> vector<8x8xf32>
    %cst_91 = arith.constant 0.353553385 : f32
    %226 = vector.broadcast %cst_91 : f32 to vector<8x8xf32>
    %227 = arith.mulf %225, %226 : vector<8x8xf32>
    %cst_92 = arith.constant -1.000000e+09 : f32
    %228 = vector.shape_cast %10 : vector<1x8xi1> to vector<1x8xi1>
    %229 = vector.broadcast %228 : vector<1x8xi1> to vector<8x8xi1>
    %230 = vector.broadcast %cst_92 : f32 to vector<8x8xf32>
    %231 = arith.select %229, %230, %227 : vector<8x8xi1>, vector<8x8xf32>
    %232 = tpu.concatenate %204, %213, %222, %231 in 1 : vector<8x8xf32>, vector<8x8xf32>, vector<8x8xf32>, vector<8x8xf32> -> vector<8x32xf32>
    %c0_93 = arith.constant 0 : index
    %c0_94 = arith.constant 0 : index
    %233 = vector.load %arg3[%c0_93, %c0_94] : memref<8x32xf32, #tpu.memory_space<vmem>>, vector<8x32xf32>
    tpu.vector_store %arg3[%c0_93, %c0_94], %232 {strides = array<i32>} : memref<8x32xf32, #tpu.memory_space<vmem>>, vector<8x32xf32>,
    return
  }
  func.func @transform_0(%arg0: i32) -> (i32, i32) {
    %c0_i32 = arith.constant 0 : i32
    %c0_i32_0 = arith.constant 0 : i32
    return %arg0, %c0_i32 : i32, i32
  }
  func.func @transform_1(%arg0: i32) -> (i32, i32) {
    %c0_i32 = arith.constant 0 : i32
    %c0_i32_0 = arith.constant 0 : i32
    %c0_i32_1 = arith.constant 0 : i32
    return %c0_i32, %c0_i32_0 : i32, i32
  }
  func.func @transform_2(%arg0: i32) -> (i32, i32) {
    %c0_i32 = arith.constant 0 : i32
    %c0_i32_0 = arith.constant 0 : i32
    return %arg0, %c0_i32 : i32, i32
  }
}

</mosaic_0001>

<bundles_post_ra>
// kernel: image_encoder_only_attention.1
= control target key start
LH: loop header
LB: loop body
LE: loop exit
PB: predicated region body
PF: predicated region fallthrough
CT: control target
= control target key end

     0   :  { %s2539_s9 = smov 0   ;;  %s2897_s0 = inlined_call_operand.vmem [shape: f32[16,32], index: 0, kind: input, shape index: {}]   ;;  %s2898_s1 = inlined_call_operand.vmem [shape: f32[424,128], index: 1, kind: input, shape index: {}]   ;;  %s2899_s2 = inlined_call_operand.vmem [shape: f32[16,32], index: 2, kind: output, shape index: {}]  }
   0x1 LB: > { %s2102_s10 = sadd.s32 4294967295, %s2511_s9   ;;  %p2106_p0 = scmp.ge.s32.totalorder %s2511_s9, 1  ;;  %s2511_s9 = sphi %s2539_s9, %s12_s9  }
   0x2   : > { %p111_p1 = scmp.lt.s32.totalorder %s2511_s9, 3 }
   0x4   : > { %p112_p2 = pnand %p2106_p0, %p111_p1 }
   0x5   : > { %v140_v0 = vld [vmem:[%s2898_s1] sm:$0xff] (!%p112_p2)  ;;  %v141_v1 = vld [vmem:[%s2898_s1 + $0x8] sm:$0xff] (!%p112_p2)  ;;  %v142_v2 = vld [vmem:[%s2898_s1 + $0x10] sm:$0xff] (!%p112_p2)  ;;  %v2513_v3 = vmov (!%p112_p2), 0.0|0.0   ;;  %vm2514_vm0 = vmmov (!%p112_p2), 0   ;;  %v2515_v6 = vmov (!%p112_p2), 0.0   ;;  %v620_v53 = vlaneseq (!%p112_p2) }
   0x6   : > { %115 = sbr.rel (%p112_p2) target bundleno = 3426 (0xd62), region = 28  ;;  %2402 = vmatprep.subr.bf16.mxu0 (!%p112_p2), %v2513_v3  ;;  %v2403_v4 = vpack.c.bf16 (!%p112_p2), %v141_v1, %v140_v0  ;;  %v143_v5 = vld [vmem:[%s2898_s1 + $0x18] sm:$0xff] (!%p112_p2)  ;;  %2238 = vmatprep.mubr.msk.f32.mxu0 (!%p112_p2), %vm2514_vm0, %v2515_v6  ;;  %p131_p3 = scmp.lt.s32.totalorder (!%p112_p2), %s2102_s10, 1  ;;  %v383_v8 = vld [vmem:[%s2898_s1 + $0x50] sm:$0xff] (!%p112_p2)  ;;  %vm149_vm1 = vcmask (!%p112_p2), 261120   ;;  %v385_v12 = vld [vmem:[%s2898_s1 + $0x60] sm:$0xff] (!%p112_p2) }
   0x7   : > { %2241 = vmatprep.subr.mxu1 (!%p112_p2), %v2515_v6  ;;  %2243 = vmatprep.mubr.msk.f32.mxu1 (!%p112_p2), %vm2514_vm0, %v2515_v6  ;;  %v2406_v7 = vpack.c.bf16 (!%p112_p2), %v143_v5, %v142_v2  ;;  %v384_v9 = vld [vmem:[%s2898_s1 + $0x58] sm:$0xff] (!%p112_p2)  ;;  %v386_v13 = vld [vmem:[%s2898_s1 + $0x68] sm:$0xff] (!%p112_p2)  ;;  %v2109_v15 = vld [vmem:[%s2898_s1 + $0x20] ss:$0 sm:$0xff] (!%p112_p2)  ;;  %v2516_v25 = vmov (!%p112_p2), 1.0   ;;  %vm541_vm2 = vcmask (!%p112_p2), 64512  }
   0x8   : > { %2404 = vmatpush3.bf16.msra.mxu0 (!%p112_p2), %v2403_v4  ;;  %v2415_v11 = vpack.c.bf16 (!%p112_p2), %v384_v9, %v383_v8  ;;  %v2418_v14 = vpack.c.bf16 (!%p112_p2), %v386_v13, %v385_v12  ;;  %v301_v19 = vld [vmem:[%s2898_s1 + $0x28] sm:$0xff] (!%p112_p2)  ;;  %v302_v20 = vld [vmem:[%s2898_s1 + $0x30] sm:$0xff] (!%p112_p2)  ;;  %v303_v23 = vld [vmem:[%s2898_s1 + $0x38] sm:$0xff] (!%p112_p2)  ;;  %s2518_s27 = smov (!%p112_p2), 120   ;;  %s2519_s4 = smov (!%p112_p2), 104   ;;  %v621_v54 = vshrl.u32 (!%p112_p2), %v620_v53, 7 }
   0x9   : > { %2405 = vmatprep.subr.bf16.mxu0 (!%p112_p2), %v2513_v3  ;;  %v2409_v22 = vpack.c.bf16 (!%p112_p2), %v302_v20, %v301_v19  ;;  %v304_v24 = vld [vmem:[%s2898_s1 + $0x40] sm:$0xff] (!%p112_p2)  ;;  %v462_v27 = vld [vmem:[%s2898_s1 + $0x78] sm:$0xff] (!%p112_p2)  ;;  %v464_v30 = vld [vmem:[%s2898_s1 + $0x88] sm:$0xff] (!%p112_p2)  ;;  %v2520_v56 = vmov (!%p112_p2), 0   ;;  %s2521_s15 = smov (!%p112_p2), 8   ;;  %s2522_s16 = smov (!%p112_p2), 16  }
   0xa   : > { %v2412_v26 = vpack.c.bf16 (!%p112_p2), %v304_v24, %v303_v23  ;;  %v463_v28 = vld [vmem:[%s2898_s1 + $0x80] sm:$0xff] (!%p112_p2)  ;;  %v465_v31 = vld [vmem:[%s2898_s1 + $0x90] sm:$0xff] (!%p112_p2)  ;;  %v2113_v39 = vld [vmem:[%s2898_s1 + $0x48] ss:$0 sm:$0xff] (!%p112_p2)  ;;  %v622_v55 = vsub.s32 (!%p112_p2), 0, %v621_v54  ;;  %s2523_s17 = smov (!%p112_p2), 24  }
   0xb   : > { %v2421_v29 = vpack.c.bf16 (!%p112_p2), %v463_v28, %v462_v27  ;;  %v2424_v32 = vpack.c.bf16 (!%p112_p2), %v465_v31, %v464_v30  ;;  %v2115_v33 = vld [vmem:[%s2898_s1 + $0x70] ss:$0 sm:$0xff] (!%p112_p2)  ;;  %v2117_v43 = vld [vmem:[%s2898_s1 + $0x98] ss:$0 sm:$0xff] (!%p112_p2)  ;;  %vm883_vm5 = vcmask (!%p112_p2), 130112   ;;  %vm1056_vm6 = vcmask (!%p112_p2), 195712  }
   0xc   : > { %2407 = vmatpush3.bf16.msra.mxu0 (!%p112_p2), %v2406_v7  ;;  %vm1229_vm7 = vcmask (!%p112_p2), 261312   ;;  %vm1445_vm10 = vcmask (!%p112_p2), 523264   ;;  %vm2044_vm13 = vcmask (!%p112_p2), 130048   ;;  %vm2046_vm14 = vcmask (!%p112_p2), 195584  }
   0xd   : > { %s2901_s10 = smov (!%p131_p3, %s2102_s10), 1  ;;  %2414 = vmatprep.subr.bf16.mxu0 %v2513_v3 }
   0xe   : > { %s2107_s23 = sshll.u32 %s2901_s10, 3 }
   0xf   : > { %s134_s26 = scalar_lea.vmem %s2897_s0, %s2107_s23 }
  0x10   : > { %v139_v10 = vld [vmem:[%s134_s26] sm:$0xff]  ;;  %s2517_s26 = smov 112  }
  0x11   : > { %2239 = vmatmul.mubr.msk.f32.vlgmr.msra.gmra.mrb[0].mxu0 %vm149_vm1, %v139_v10 }
  0x12   : > { %2416 = vmatpush3.bf16.msra.mxu0 %v2415_v11  ;;  %2265 = vmatprep.mubr.msk.f32.mxu0 %vm2514_vm0, %v2515_v6 }
  0x13   : > { %2417 = vmatprep.subr.bf16.mxu0 %v2513_v3 }
  0x16   : > { %2419 = vmatpush3.bf16.msra.mxu0 %v2418_v14 }
  0x17   : > { %2279 = vmatprep.subr.mxu0 %v2515_v6 }
  0xe4   : > { %v219_v16 = vpop.f32.mrb[0].mxu0 }
  0xe5   : > { %v2595_v17 = vadd.f32 %v2109_v15, %v219_v16  ;;  %v2240_v18 = vpop.f32.mrb[1].mxu0 }
  0xe7   : > { %2266 = vmatmul.mubr.msk.f32.vlgmr.msra.gmra.mrb[2].mxu0 %vm149_vm1, %v2595_v17  ;;  %v223_v21 = vand.u32 2147483647, %v2595_v17 }
  0xe8   : > { %2281 = vmatprep.mubr.msk.f32.mxu0 %vm2514_vm0, %v2515_v6 }
  0xe9   : > { %2242 = vmatpush3.xpose.msk.msra.mxu1 %vm149_vm1, %v223_v21 }
  0xea   : > { %2408 = vmatprep.subr.bf16.mxu1 %v2513_v3 }
  0xec   : > { %2244 = vmatmul.mubr.msk.f32.vlgmr.msra.gmra.mrb[0].mxu1 %vm149_vm1, %v2516_v25 }
  0xed   : > { %2410 = vmatpush3.bf16.msra.mxu1 %v2409_v22  ;;  %2254 = vmatprep.mubr.msk.f32.mxu1 %vm2514_vm0, %v2515_v6 }
  0xee   : > { %2411 = vmatprep.subr.bf16.mxu1 %v2513_v3 }
  0xf1   : > { %2413 = vmatpush3.bf16.msra.mxu1 %v2412_v26 }
  0xf2   : > { %2420 = vmatprep.subr.bf16.mxu1 %v2513_v3 }
  0xf4   : > { %2255 = vmatmul.mubr.msk.f32.vlgmr.msra.gmra.mrb[2].mxu1 %vm149_vm1, %v2595_v17 }
  0xf5   : > { %2422 = vmatpush3.bf16.msra.mxu1 %v2421_v29  ;;  %2276 = vmatprep.mubr.msk.f32.mxu1 %vm2514_vm0, %v2515_v6 }
  0xf6   : > { %2423 = vmatprep.subr.bf16.mxu1 %v2513_v3 }
  0xf9   : > { %2425 = vmatpush3.bf16.msra.mxu1 %v2424_v32 }
  0xfa   : > { %2289 = vmatprep.subr.mxu1 %v2515_v6 }
  0xfc   : > { %2277 = vmatmul.mubr.msk.f32.vlgmr.msra.gmra.mrb[4].mxu1 %vm149_vm1, %v2595_v17 }
  0xfd   : > { %2291 = vmatprep.mubr.msk.f32.mxu1 %vm2514_vm0, %v2515_v6 }
 0x1ba   : > { %v458_v34 = vpop.f32.mrb[2].mxu0 }
 0x1bb   : > { %v459_v35 = vadd.f32 %v2115_v33, %v458_v34  ;;  %v2267_v36 = vpop.f32.mrb[3].mxu0 }
 0x1bd   : > { %887 = vrot.lane.b32.xlu1 %v459_v35, %s2517_s26  ;;  %713 = vrot.lane.b32.xlu0 %v459_v35, %s2518_s27 }
 0x1be   : > { %2280 = vmatpush3.xpose.msk.msra.mxu0 %vm541_vm2, %v459_v35 }
 0x1bf   : > { %v296_v37 = vpop.f32.mrb[0].mxu1  ;;  %2284 = vmatprep.subr.mxu0 %v2515_v6 }
 0x1c0   : > { %v2245_v38 = vpop.f32.mrb[1].mxu1  ;;  %vm300_vm3 = vcmp.eq.f32.partialorder %v296_v37, 0.0 }
 0x1c1   : > { %v619_v57 = vsel %vm300_vm3, 1, %v2520_v56  ;;  %v1233_v56 = vld [vmem:[%s2898_s1 + $0xa8] sm:$0xff] }
 0x1c2   : > { %v2682_v58 = vrot.slane %v619_v57, %v622_v55  ;;  %v1232_v55 = vld [vmem:[%s2898_s1 + $0xa0] sm:$0xff] }
 0x1c3   : > { %v2427_v57 = vpack.c.bf16 %v1233_v56, %v1232_v55 }
 0x1c4   : > { %vm624_vm4 = vcmp.eq.s32.totalorder %v2682_v58, 1 }
 0x1c7   : > { %v379_v40 = vpop.f32.mrb[2].mxu1 }
 0x1c8   : > { %v380_v41 = vadd.f32 %v2113_v39, %v379_v40  ;;  %v2256_v42 = vpop.f32.mrb[3].mxu1 }
 0x1ca   : > { %885 = vrot.lane.b32.xlu1 %v380_v41, %s2517_s26  ;;  %711 = vrot.lane.b32.xlu0 %v380_v41, %s2518_s27 }
 0x1cb   : > { %2282 = vmatmul.mubr.msk.f32.vlgmr.msra.gmra.mrb[4].mxu0 %vm541_vm2, %v380_v41 }
 0x1cc   : > { %2286 = vmatprep.mubr.msk.f32.mxu0 %vm2514_vm0, %v2515_v6 }
 0x1ce   : > { %1058 = vrot.lane.b32.xlu1 %v380_v41, %s2519_s4  ;;  %1060 = vrot.lane.b32.xlu0 %v459_v35, %s2519_s4 }
 0x1cf   : > { %v537_v44 = vpop.f32.mrb[4].mxu1 }
 0x1d0   : > { %v2663_v45 = vadd.f32 %v2117_v43, %v537_v44  ;;  %v2278_v46 = vpop.f32.mrb[5].mxu1 }
 0x1d2   : > { %2285 = vmatpush3.msra.mxu0 %v2663_v45 }
 0x1d3   : > { %2294 = vmatprep.subr.mxu0 %v2515_v6 }
 0x22f   : > { %v714_v47 = vpop.permute.xlu0 %713  ;;  %v888_v48 = vpop.permute.xlu1 %887 }
 0x230   : > { %2290 = vmatpush3.xpose.msk.msra.mxu1 %vm541_vm2, %v714_v47 }
 0x231   : > { %2299 = vmatprep.subr.mxu1 %v2515_v6 }
 0x23c   : > { %v712_v49 = vpop.permute.xlu0 %711  ;;  %v886_v50 = vpop.permute.xlu1 %885 }
 0x23d   : > { %2292 = vmatmul.mubr.msk.f32.vlgmr.msra.gmra.mrb[6].mxu1 %vm541_vm2, %v712_v49 }
 0x23e   : > { %2300 = vmatpush3.xpose.msk.msra.mxu1 %vm541_vm2, %v888_v48  ;;  %2301 = vmatprep.mubr.msk.f32.mxu1 %vm2514_vm0, %v2515_v6 }
 0x23f   : > { %2309 = vmatprep.subr.mxu1 %v2515_v6 }
 0x240   : > { %v1061_v51 = vpop.permute.xlu0 %1060  ;;  %v1059_v52 = vpop.permute.xlu1 %1058 }
 0x241   : > { %2302 = vmatmul.mubr.msk.f32.vlgmr.msra.gmra.mrb[8].mxu1 %vm541_vm2, %v886_v50 }
 0x242   : > { %2310 = vmatpush3.xpose.msk.msra.mxu1 %vm541_vm2, %v1061_v51  ;;  %2311 = vmatprep.mubr.msk.f32.mxu1 %vm2514_vm0, %v2515_v6 }
 0x243   : > { %2426 = vmatprep.subr.bf16.mxu1 %v2513_v3 }
 0x245   : > { %2312 = vmatmul.mubr.msk.f32.vlgmr.msra.gmra.mrb[10].mxu1 %vm541_vm2, %v1059_v52 }
 0x246   : > { %2327 = vmatprep.mubr.msk.f32.mxu1 %vm2514_vm0, %v2515_v6  ;;  %2428 = vmatpush3.bf16.msra.mxu1 %v2427_v57 }
 0x247   : > { %2429 = vmatprep.subr.bf16.mxu1 %v2513_v3 }
 0x29e   : > { %v614_v59 = vpop.f32.mrb[4].mxu0 }
 0x29f   : > { %v618_v60 = vmul.f32 0.35355338, %v614_v59  ;;  %v2283_v61 = vpop.f32.mrb[5].mxu0  ;;  %v1234_v59 = vld [vmem:[%s2898_s1 + $0xb0] sm:$0xff] }
 0x2a1   : > { %v625_v62 = vsel %vm624_vm4, -1e+09, %v618_v60  ;;  %v1235_v60 = vld [vmem:[%s2898_s1 + $0xb8] sm:$0xff] }
 0x2a2   : > { %v626_v63 = vsel %vm541_vm2, %v625_v62, -inf  ;;  %v2430_v61 = vpack.c.bf16 %v1235_v60, %v1234_v59  ;;  %v2137_v59 = vld [vmem:[%s2898_s1 + $0x130] ss:$0 sm:$0xff] }
 0x2a3   : > { %627 = vmax.xlane.f32.xlu0 %v626_v63 }
 0x2a4   : > { %2431 = vmatpush3.bf16.msra.mxu1 %v2430_v61 }
 0x2a5   : > { %2438 = vmatprep.subr.bf16.mxu1 %v2513_v3 }
 0x310   : > { %v785_v0 = vpop.f32.mrb[6].mxu1 }
 0x311   : > { %v789_v1 = vmul.f32 0.35355338, %v785_v0  ;;  %v2293_v2 = vpop.f32.mrb[7].mxu1 }
 0x313   : > { %v790_v4 = vsel %vm624_vm4, -1e+09, %v789_v1 }
 0x314   : > { %v959_v5 = vpop.f32.mrb[8].mxu1  ;;  %v791_v7 = vsel %vm541_vm2, %v790_v4, -inf }
 0x315   : > { %v963_v8 = vmul.f32 0.35355338, %v959_v5  ;;  %792 = vmax.xlane.f32.xlu1 %v791_v7  ;;  %v2303_v9 = vpop.f32.mrb[9].mxu1 }
 0x317   : > { %v964_v10 = vsel %vm624_vm4, -1e+09, %v963_v8 }
 0x318   : > { %v1132_v11 = vpop.f32.mrb[10].mxu1  ;;  %v965_v12 = vsel %vm541_vm2, %v964_v10, -inf }
 0x319   : > { %v1136_v13 = vmul.f32 0.35355338, %v1132_v11  ;;  %v2313_v14 = vpop.f32.mrb[11].mxu1  ;;  %966 = vmax.xlane.f32.xlu0 %v965_v12 }
 0x31b   : > { %v1137_v15 = vsel %vm624_vm4, -1e+09, %v1136_v13 }
 0x31c   : > { %v1138_v16 = vsel %vm541_vm2, %v1137_v15, -inf }
 0x31d   : > { %1139 = vmax.xlane.f32.xlu0 %v1138_v16 }
 0x326   : > { %803 = vrot.lane.b32.xlu1 %v2663_v45, %s2518_s27 }
 0x330   : > { %v628_v18 = vpop.xlane.xlu0 %627 }
 0x331   : > { %v629_v19 = vsub.f32 %v625_v62, %v628_v18 }
 0x333   : > { %v630_v20 = vmul.f32 1.442695, %v629_v19 }
 0x335   : > { %2481 = vpow2.f32 %v630_v20 }
 0x33f   : > { %v2482_v21 = vpop.eup %2481 }
 0x340   : > { %v632_v22 = vsel %vm541_vm2, %v2482_v21, 0.0 }
 0x34a   : > { %633 = vadd.xlane.f32.xlu1 %v632_v22  ;;  %v1349_v22 = vld [vmem:[%s2898_s1 + $0xc8] sm:$0xff] }
 0x3a2   : > { %v793_v23 = vpop.xlane.xlu1 %792 }
 0x3a3   : > { %v794_v24 = vsub.f32 %v790_v4, %v793_v23  ;;  %v1350_v23 = vld [vmem:[%s2898_s1 + $0xd0] sm:$0xff] }
 0x3a5   : > { %v795_v25 = vmul.f32 1.442695, %v794_v24  ;;  %v2433_v24 = vpack.c.bf16 %v1350_v23, %v1349_v22  ;;  %v2139_v23 = vld [vmem:[%s2898_s1 + $0x148] ss:$0 sm:$0xff] }
 0x3a6   : > { %v967_v26 = vpop.xlane.xlu0 %966  ;;  %v804_v38 = vpop.permute.xlu1 %803 }
 0x3a7   : > { %2483 = vpow2.f32 %v795_v25  ;;  %v968_v27 = vsub.f32 %v964_v10, %v967_v26  ;;  %v2131_v10 = vld [vmem:[%s2898_s1 + $0xc0] ss:$0 sm:$0xff] }
 0x3a8   : > { %v1352_v25 = vld [vmem:[%s2898_s1 + $0xe0] sm:$0xff] }
 0x3a9   : > { %v969_v28 = vmul.f32 1.442695, %v968_v27  ;;  %v1432_v27 = vld [vmem:[%s2898_s1 + $0xf0] sm:$0xff] }
 0x3aa   : > { %v1140_v29 = vpop.xlane.xlu0 %1139 }
 0x3ab   : > { %2485 = vpow2.f32 %v969_v28  ;;  %v1141_v30 = vsub.f32 %v1137_v15, %v1140_v29  ;;  %v1433_v28 = vld [vmem:[%s2898_s1 + $0xf8] sm:$0xff]  ;;  %v1434_v29 = vld [vmem:[%s2898_s1 + $0x100] sm:$0xff] }
 0x3ad   : > { %v1142_v31 = vmul.f32 1.442695, %v1141_v30  ;;  %v2439_v30 = vpack.c.bf16 %v1433_v28, %v1432_v27  ;;  %v2140_v27 = vld [vmem:[%s2898_s1 + $0x150] ss:$0 sm:$0xff] }
 0x3af   : > { %2487 = vpow2.f32 %v1142_v31  ;;  %v1435_v31 = vld [vmem:[%s2898_s1 + $0x108] sm:$0xff] }
 0x3b1   : > { %v2484_v32 = vpop.eup %2483 }
 0x3b2   : > { %v797_v33 = vsel %vm541_vm2, %v2484_v32, 0.0 }
 0x3b3   : > { %798 = vadd.xlane.f32.xlu0 %v797_v33  ;;  %v1436_v33 = vld [vmem:[%s2898_s1 + $0x110] sm:$0xff] }
 0x3b5   : > { %v2486_v34 = vpop.eup %2485 }
 0x3b6   : > { %v971_v35 = vsel %vm541_vm2, %v2486_v34, 0.0 }
 0x3b7   : > { %972 = vadd.xlane.f32.xlu1 %v971_v35 }
 0x3b9   : > { %v2488_v36 = vpop.eup %2487 }
 0x3ba   : > { %v1144_v37 = vsel %vm541_vm2, %v2488_v36, 0.0 }
 0x3bb   : > { %1145 = vadd.xlane.f32.xlu0 %v1144_v37 }
 0x3c8   : > { %1149 = vrot.lane.b32.xlu1 %v2663_v45, %s2519_s4 }
 0x3d1   : > { %976 = vrot.lane.b32.xlu0 %v2663_v45, %s2517_s26 }
 0x3d7   : > { %v634_v39 = vpop.xlane.xlu1 %633 }
 0x3d8   : > { %2489 = vrcp.f32 %v634_v39 }
 0x3e2   : > { %v2490_v40 = vpop.eup %2489 }
 0x3e3   : > { %v636_v41 = vmul.f32 %v2490_v40, %v2482_v21 }
 0x3e5   : > { %2287 = vmatmul.mubr.msk.f32.vlgmr.msra.gmra.mrb[6].mxu0 %vm541_vm2, %v636_v41 }
 0x3e6   : > { %2295 = vmatpush3.msra.mxu0 %v804_v38  ;;  %2296 = vmatprep.mubr.msk.f32.mxu0 %vm2514_vm0, %v2515_v6 }
 0x3e7   : > { %2304 = vmatprep.subr.mxu0 %v2515_v6 }
 0x440   : > { %v799_v42 = vpop.xlane.xlu0 %798 }
 0x441   : > { %2491 = vrcp.f32 %v799_v42 }
 0x444   : > { %v973_v43 = vpop.xlane.xlu1 %972 }
 0x445   : > { %2493 = vrcp.f32 %v973_v43 }
 0x448   : > { %v1146_v44 = vpop.xlane.xlu0 %1145  ;;  %v1150_v50 = vpop.permute.xlu1 %1149 }
 0x449   : > { %2495 = vrcp.f32 %v1146_v44  ;;  %v2133_v44 = vld [vmem:[%s2898_s1 + $0x138] ss:$0 sm:$0xff] }
 0x44b   : > { %v2492_v45 = vpop.eup %2491 }
 0x44c   : > { %v801_v46 = vmul.f32 %v2492_v45, %v2484_v32  ;;  %v977_v47 = vpop.permute.xlu0 %976  ;;  %v2442_v32 = vpack.c.bf16 %v1435_v31, %v1434_v29  ;;  %v1636_v31 = vld [vmem:[%s2898_s1 + $0x190] sm:$0xff] }
 0x44e   : > { %2297 = vmatmul.mubr.msk.f32.vlgmr.msra.gmra.mrb[8].mxu0 %vm541_vm2, %v801_v46 }
 0x44f   : > { %v2494_v48 = vpop.eup %2493  ;;  %2305 = vmatpush3.msra.mxu0 %v977_v47  ;;  %2306 = vmatprep.mubr.msk.f32.mxu0 %vm2514_vm0, %v2515_v6  ;;  %v2134_v47 = vld [vmem:[%s2898_s1 + $0x140] ss:$0 sm:$0xff] }
 0x450   : > { %v975_v49 = vmul.f32 %v2494_v48, %v2486_v34  ;;  %2314 = vmatprep.subr.mxu0 %v2515_v6  ;;  %v1437_v34 = vld [vmem:[%s2898_s1 + $0x118] sm:$0xff] }
 0x451   : > { %v2445_v35 = vpack.c.bf16 %v1437_v34, %v1436_v33  ;;  %v2141_v34 = vld [vmem:[%s2898_s1 + $0x178] ss:$0 sm:$0xff] }
 0x452   : > { %2307 = vmatmul.mubr.msk.f32.vlgmr.msra.gmra.mrb[10].mxu0 %vm541_vm2, %v975_v49 }
 0x453   : > { %v2496_v51 = vpop.eup %2495  ;;  %2315 = vmatpush3.msra.mxu0 %v1150_v50  ;;  %2316 = vmatprep.mubr.msk.f32.mxu0 %vm2514_vm0, %v2515_v6  ;;  %v1438_v50 = vld [vmem:[%s2898_s1 + $0x120] sm:$0xff] }
 0x454   : > { %v1148_v52 = vmul.f32 %v2496_v51, %v2488_v36  ;;  %2432 = vmatprep.subr.bf16.mxu0 %v2513_v3  ;;  %v1439_v51 = vld [vmem:[%s2898_s1 + $0x128] sm:$0xff] }
 0x456   : > { %2317 = vmatmul.mubr.msk.f32.vlgmr.msra.gmra.mrb[12].mxu0 %vm541_vm2, %v1148_v52  ;;  %v2448_v52 = vpack.c.bf16 %v1439_v51, %v1438_v50 }
 0x457   : > { %2338 = vmatprep.mubr.msk.f32.mxu0 %vm2514_vm0, %v2515_v6  ;;  %2434 = vmatpush3.bf16.msra.mxu0 %v2433_v24  ;;  %v1634_v24 = vld [vmem:[%s2898_s1 + $0x180] sm:$0xff] }
 0x458   : > { %2435 = vmatprep.subr.bf16.mxu0 %v2513_v3 }
 0x4b8   : > { %v706_v53 = vpop.f32.mrb[6].mxu0 }
 0x4b9   : > { %710 = vst.msk [vmem:[#allocation2] sm:$0xff] %vm541_vm2, %v706_v53  ;;  %v2288_v54 = vpop.f32.mrb[7].mxu0  ;;  %v2135_v53 = vld [vmem:[%s2898_s1 + $0xe8] ss:$0 sm:$0xff] }
 0x521   : > { %v875_v62 = vpop.f32.mrb[8].mxu0 }
 0x522   : > { %880 = vrot.lane.b32.xlu1 %v875_v62, %s2521_s15  ;;  %v2298_v63 = vpop.f32.mrb[9].mxu0 }
 0x525   : > { %v1048_v0 = vpop.f32.mrb[10].mxu0 }
 0x526   : > { %1053 = vrot.lane.b32.xlu0 %v1048_v0, %s2522_s16  ;;  %v2308_v1 = vpop.f32.mrb[11].mxu0 }
 0x529   : > { %v1221_v2 = vpop.f32.mrb[12].mxu0 }
 0x52a   : > { %1226 = vrot.lane.b32.xlu1 %v1221_v2, %s2523_s17  ;;  %v2318_v4 = vpop.f32.mrb[13].mxu0 }
 0x594   : > { %v881_v5 = vpop.permute.xlu1 %880 }
 0x595   : > { %884 = vst.msk [vmem:[#allocation2] sm:$0xff] %vm883_vm5, %v881_v5 }
 0x598   : > { %v1054_v7 = vpop.permute.xlu0 %1053 }
 0x599   : > { %1057 = vst.msk [vmem:[#allocation2] sm:$0xff] %vm1056_vm6, %v1054_v7 }
 0x59c   : > { %v1227_v8 = vpop.permute.xlu1 %1226 }
 0x59d   : > { %1230 = vst.msk [vmem:[#allocation2] sm:$0xff] %vm1229_vm7, %v1227_v8  ;;  %v1552_v8 = vld [vmem:[%s2898_s1 + $0x158] sm:$0xff] }
 0x5a4   : > { %v1231_v9 = vld [vmem:[#allocation2] sm:$0xff] }
 0x5a5   : > { %2328 = vmatmul.mubr.msk.f32.vlgmr.msra.gmra.mrb[12].mxu1 %vm149_vm1, %v1231_v9  ;;  %v1553_v9 = vld [vmem:[%s2898_s1 + $0x160] sm:$0xff] }
 0x5a6   : > { %2357 = vmatprep.mubr.msk.f32.mxu1 %vm2514_vm0, %v2515_v6  ;;  %2440 = vmatpush3.bf16.msra.mxu1 %v2439_v30 }
 0x5a7   : > { %2441 = vmatprep.subr.bf16.mxu1 %v2513_v3 }
 0x5aa   : > { %2443 = vmatpush3.bf16.msra.mxu1 %v2442_v32  ;;  %v1637_v32 = vld [vmem:[%s2898_s1 + $0x198] sm:$0xff] }
 0x5ab   : > { %2444 = vmatprep.subr.bf16.mxu1 %v2513_v3  ;;  %v2460_v33 = vpack.c.bf16 %v1637_v32, %v1636_v31 }
 0x5ae   : > { %2446 = vmatpush3.bf16.msra.mxu1 %v2445_v35 }
 0x5af   : > { %2447 = vmatprep.subr.bf16.mxu1 %v2513_v3 }
 0x5b2   : > { %2449 = vmatpush3.bf16.msra.mxu1 %v2448_v52 }
 0x5b3   : > { %2382 = vmatprep.subr.mxu1 %v2515_v6 }
 0x678   : > { %v1310_v11 = vpop.f32.mrb[12].mxu1 }
 0x679   : > { %v1311_v12 = vadd.f32 %v2131_v10, %v1310_v11  ;;  %v2329_v13 = vpop.f32.mrb[13].mxu1  ;;  %v1554_v10 = vld [vmem:[%s2898_s1 + $0x168] sm:$0xff]  ;;  %v2451_v11 = vpack.c.bf16 %v1553_v9, %v1552_v8 }
 0x67b   : > { %v1314_v14 = vadd.f32 %v1311_v12, %v2595_v17  ;;  %v1351_v17 = vld [vmem:[%s2898_s1 + $0xd8] sm:$0xff]  ;;  %v1555_v12 = vld [vmem:[%s2898_s1 + $0x170] sm:$0xff] }
 0x67c   : > { %v2436_v26 = vpack.c.bf16 %v1352_v25, %v1351_v17  ;;  %v2454_v13 = vpack.c.bf16 %v1555_v12, %v1554_v10  ;;  %v1635_v25 = vld [vmem:[%s2898_s1 + $0x188] sm:$0xff] }
 0x67d   : > { %v1317_v15 = vsel %vm149_vm1, %v1314_v14, 0.0  ;;  %v2457_v29 = vpack.c.bf16 %v1635_v25, %v1634_v24 }
 0x67e   : > { %1318 = vadd.xlane.f32.xlu0 %v1317_v15  ;;  %2437 = vmatpush3.bf16.msra.mxu0 %v2436_v26 }
 0x67f   : > { %2450 = vmatprep.subr.bf16.mxu0 %v2513_v3 }
 0x70b   : > { %v1319_v16 = vpop.xlane.xlu0 %1318 }
 0x70c   : > { %v1321_v18 = vmul.f32 0.03125, %v1319_v16 }
 0x70e   : > { %v1322_v19 = vsub.f32 %v1314_v14, %v1321_v18 }
 0x710   : > { %v1323_v20 = vmul.f32 %v1322_v19, %v1322_v19  ;;  %v1333_v45 = vmul.f32 %v2133_v44, %v1322_v19 }
 0x712   : > { %v1324_v21 = vsel %vm149_vm1, %v1323_v20, 0.0 }
 0x713   : > { %1325 = vadd.xlane.f32.xlu1 %v1324_v21 }
 0x7a0   : > { %v1326_v36 = vpop.xlane.xlu1 %1325 }
 0x7a1   : > { %v1328_v37 = vmul.f32 0.032258064, %v1326_v36 }
 0x7a3   : > { %2497 = vrsqrt.f32 %v1328_v37  ;;  %vm1336_vm8 = vcmp.eq.f32.partialorder %v1328_v37, inf  ;;  %v1339_v40 = vand.u32 2147483648, %v1328_v37  ;;  %vm1338_vm9 = vcmp.eq.f32.partialorder %v1328_v37, 0.0 }
 0x7ad   : > { %v2498_v38 = vpop.eup %2497 }
 0x7ae   : > { %v1335_v39 = vmul.f32 %v2498_v38, %v1328_v37 }
 0x7b0   : > { %v1337_v41 = vsel %vm1336_vm8, %v1328_v37, %v1335_v39 }
 0x7b1   : > { %v1340_v42 = vsel %vm1338_vm9, %v1339_v40, %v1337_v41 }
 0x7b2   : > { %v1341_v43 = vadd.f32 1e-06, %v1340_v42 }
 0x7b4   : > { %2499 = vrcp.f32 %v1341_v43 }
 0x7be   : > { %v2500_v46 = vpop.eup %2499 }
 0x7bf   : > { %v1343_v48 = vmul.f32 %v2500_v46, %v1333_v45 }
 0x7c1   : > { %v1348_v49 = vadd.f32 %v2134_v47, %v1343_v48 }
 0x7c3   : > { %2339 = vmatmul.mubr.msk.f32.vlgmr.msra.gmra.mrb[14].mxu0 %vm149_vm1, %v1348_v49 }
 0x7c4   : > { %2368 = vmatprep.mubr.msk.f32.mxu0 %vm2514_vm0, %v2515_v6  ;;  %2452 = vmatpush3.bf16.msra.mxu0 %v2451_v11 }
 0x7c5   : > { %2453 = vmatprep.subr.bf16.mxu0 %v2513_v3 }
 0x7c8   : > { %2455 = vmatpush3.bf16.msra.mxu0 %v2454_v13 }
 0x7c9   : > { %2456 = vmatprep.subr.bf16.mxu0 %v2513_v3 }
 0x896   : > { %v1427_v54 = vpop.f32.mrb[14].mxu0 }
 0x897   : > { %v1428_v55 = vadd.f32 %v2135_v53, %v1427_v54  ;;  %v2340_v56 = vpop.f32.mrb[15].mxu0 }
 0x899   : > { %v1431_v57 = vmax.f32 %v1428_v55, 0.0 }
 0x89b   : > { %2358 = vmatmul.mubr.msk.f32.vlgmr.msra.gmra.mrb[14].mxu1 %vm1445_vm10, %v1431_v57 }
 0x89c   : > { %2384 = vmatprep.mubr.msk.f32.mxu1 %vm2514_vm0, %v2515_v6 }
 0x96e   : > { %v1515_v60 = vpop.f32.mrb[14].mxu1 }
 0x96f   : > { %v1516_v61 = vadd.f32 %v2137_v59, %v1515_v60  ;;  %v2359_v62 = vpop.f32.mrb[15].mxu1 }
 0x971   : > { %v1519_v63 = vadd.f32 %v1516_v61, %v1348_v49 }
 0x973   : > { %v1522_v0 = vsel %vm149_vm1, %v1519_v63, 0.0 }
 0x974   : > { %1523 = vadd.xlane.f32.xlu0 %v1522_v0 }
 0xa01   : > { %v1524_v1 = vpop.xlane.xlu0 %1523 }
 0xa02   : > { %v1525_v2 = vmul.f32 0.03125, %v1524_v1 }
 0xa04   : > { %v1526_v4 = vsub.f32 %v1519_v63, %v1525_v2 }
 0xa06   : > { %v1527_v5 = vmul.f32 %v1526_v4, %v1526_v4  ;;  %v1536_v17 = vmul.f32 %v2139_v23, %v1526_v4 }
 0xa08   : > { %v1528_v7 = vsel %vm149_vm1, %v1527_v5, 0.0 }
 0xa09   : > { %1529 = vadd.xlane.f32.xlu0 %v1528_v7 }
 0xa96   : > { %v1530_v14 = vpop.xlane.xlu0 %1529 }
 0xa97   : > { %v1531_v15 = vmul.f32 0.032258064, %v1530_v14 }
 0xa99   : > { %2501 = vrsqrt.f32 %v1531_v15  ;;  %vm1539_vm11 = vcmp.eq.f32.partialorder %v1531_v15, inf  ;;  %v1542_v19 = vand.u32 2147483648, %v1531_v15  ;;  %vm1541_vm12 = vcmp.eq.f32.partialorder %v1531_v15, 0.0 }
 0xaa3   : > { %v2502_v16 = vpop.eup %2501 }
 0xaa4   : > { %v1538_v18 = vmul.f32 %v2502_v16, %v1531_v15 }
 0xaa6   : > { %v1540_v20 = vsel %vm1539_vm11, %v1531_v15, %v1538_v18 }
 0xaa7   : > { %v1543_v21 = vsel %vm1541_vm12, %v1542_v19, %v1540_v20 }
 0xaa8   : > { %v1544_v22 = vadd.f32 1e-06, %v1543_v21 }
 0xaaa   : > { %2503 = vrcp.f32 %v1544_v22 }
 0xab4   : > { %v2504_v26 = vpop.eup %2503 }
 0xab5   : > { %v1546_v28 = vmul.f32 %v2504_v26, %v1536_v17 }
 0xab7   : > { %v1551_v30 = vadd.f32 %v2140_v27, %v1546_v28 }
 0xab9   : > { %2369 = vmatmul.mubr.msk.f32.vlgmr.msra.gmra.mrb[16].mxu0 %vm149_vm1, %v1551_v30 }
 0xaba   : > { %2458 = vmatpush3.bf16.msra.mxu0 %v2457_v29  ;;  %2379 = vmatprep.mubr.msk.f32.mxu0 %vm2514_vm0, %v2515_v6 }
 0xabb   : > { %2459 = vmatprep.subr.bf16.mxu0 %v2513_v3  ;;  %v2143_v3 = vld [vmem:[%s2898_s1 + $0x1a0] ss:$0 sm:$0xff] }
 0xabe   : > { %2461 = vmatpush3.bf16.msra.mxu0 %v2460_v33 }
 0xabf   : > { %2387 = vmatprep.subr.mxu0 %v2515_v6 }
 0xac1   : > { %2380 = vmatmul.mubr.msk.f32.vlgmr.msra.gmra.mrb[18].mxu0 %vm149_vm1, %v1551_v30 }
 0xac2   : > { %2389 = vmatprep.mubr.msk.f32.mxu0 %vm2514_vm0, %v2515_v6 }
 0xb8c   : > { %v1630_v35 = vpop.f32.mrb[16].mxu0 }
 0xb8d   : > { %v1631_v36 = vadd.f32 %v2141_v34, %v1630_v35  ;;  %v2370_v37 = vpop.f32.mrb[17].mxu0 }
 0xb8f   : > { %1791 = vrot.lane.b32.xlu0 %v1631_v36, %s2518_s27 }
 0xb93   : > { %1871 = vrot.lane.b32.xlu0 %v1631_v36, %s2517_s26 }
 0xb94   : > { %v1709_v38 = vpop.f32.mrb[18].mxu0 }
 0xb95   : > { %v1710_v39 = vadd.f32 %v2143_v3, %v1709_v38  ;;  %v2381_v40 = vpop.f32.mrb[19].mxu0 }
 0xb97   : > { %1793 = vrot.lane.b32.xlu1 %v1710_v39, %s2518_s27  ;;  %2383 = vmatpush3.xpose.msk.msra.mxu1 %vm541_vm2, %v1710_v39 }
 0xb98   : > { %2392 = vmatprep.subr.mxu1 %v2515_v6 }
 0xb9a   : > { %2385 = vmatmul.mubr.msk.f32.vlgmr.msra.gmra.mrb[16].mxu1 %vm541_vm2, %v1631_v36 }
 0xb9b   : > { %1873 = vrot.lane.b32.xlu1 %v1710_v39, %s2517_s26  ;;  %2394 = vmatprep.mubr.msk.f32.mxu1 %vm2514_vm0, %v2515_v6 }
 0xb9f   : > { %1953 = vrot.lane.b32.xlu1 %v1710_v39, %s2519_s4 }
 0xba3   : > { %1951 = vrot.lane.b32.xlu1 %v1631_v36, %s2519_s4  ;;  %s138_s4 = scalar_lea.vmem %s2899_s2, %s2107_s23 }
 0xc01   : > { %v1792_v42 = vpop.permute.xlu0 %1791 }
 0xc05   : > { %v1872_v44 = vpop.permute.xlu0 %1871 }
 0xc09   : > { %v1794_v41 = vpop.permute.xlu1 %1793 }
 0xc0a   : > { %2388 = vmatpush3.xpose.msk.msra.mxu0 %vm541_vm2, %v1794_v41 }
 0xc0b   : > { %2397 = vmatprep.subr.mxu0 %v2515_v6 }
 0xc0d   : > { %2390 = vmatmul.mubr.msk.f32.vlgmr.msra.gmra.mrb[20].mxu0 %vm541_vm2, %v1792_v42  ;;  %v1874_v43 = vpop.permute.xlu1 %1873 }
 0xc0e   : > { %2393 = vmatpush3.xpose.msk.msra.mxu1 %vm541_vm2, %v1874_v43  ;;  %2399 = vmatprep.mubr.msk.f32.mxu0 %vm2514_vm0, %v2515_v6 }
 0xc11   : > { %v1954_v45 = vpop.permute.xlu1 %1953  ;;  %2395 = vmatmul.mubr.msk.f32.vlgmr.msra.gmra.mrb[18].mxu1 %vm541_vm2, %v1872_v44 }
 0xc12   : > { %2398 = vmatpush3.xpose.msk.msra.mxu0 %vm541_vm2, %v1954_v45 }
 0xc15   : > { %v1952_v46 = vpop.permute.xlu1 %1951 }
 0xc16   : > { %2400 = vmatmul.mubr.msk.f32.vlgmr.msra.gmra.mrb[22].mxu0 %vm541_vm2, %v1952_v46 }
 0xc6d   : > { %v1785_v47 = vpop.f32.mrb[16].mxu1 }
 0xc6e   : > { %v2386_v48 = vpop.f32.mrb[17].mxu1  ;;  %v1789_v61 = vmul.f32 0.35355338, %v1785_v47 }
 0xc70   : > { %v1790_v0 = vsel %vm624_vm4, -1e+09, %v1789_v61 }
 0xce0   : > { %v1865_v49 = vpop.f32.mrb[20].mxu0 }
 0xce1   : > { %v1869_v50 = vmul.f32 0.35355338, %v1865_v49  ;;  %v2391_v51 = vpop.f32.mrb[21].mxu0 }
 0xce3   : > { %v1870_v52 = vsel %vm624_vm4, -1e+09, %v1869_v50 }
 0xce4   : > { %v1945_v53 = vpop.f32.mrb[18].mxu1  ;;  %2032 = vrot.lane.b32.xlu0 %v1870_v52, %s2521_s15 }
 0xce5   : > { %v1949_v6 = vmul.f32 0.35355338, %v1945_v53  ;;  %v2396_v54 = vpop.f32.mrb[19].mxu1 }
 0xce7   : > { %v1950_v55 = vsel %vm624_vm4, -1e+09, %v1949_v6 }
 0xce8   : > { %2036 = vrot.lane.b32.xlu1 %v1950_v55, %s2522_s16 }
 0xce9   : > { %v2025_v56 = vpop.f32.mrb[22].mxu0 }
 0xcea   : > { %v2029_v57 = vmul.f32 0.35355338, %v2025_v56  ;;  %v2401_v59 = vpop.f32.mrb[23].mxu0 }
 0xcec   : > { %v2030_v60 = vsel %vm624_vm4, -1e+09, %v2029_v57 }
 0xced   : > { %2040 = vrot.lane.b32.xlu0 %v2030_v60, %s2523_s17 }
 0xd56   : > { %v2033_v62 = vpop.permute.xlu0 %2032 }
 0xd57   : > { %v2043_v1 = vsel %vm541_vm2, %v1790_v0, %v2033_v62 }
 0xd5a   : > { %v2037_v63 = vpop.permute.xlu1 %2036 }
 0xd5b   : > { %v2045_v2 = vsel %vm2044_vm13, %v2043_v1, %v2037_v63 }
 0xd5f   : > { %v2041_v4 = vpop.permute.xlu0 %2040 }
 0xd60   : > { %v2047_v5 = vsel %vm2046_vm14, %v2045_v2, %v2041_v4 }
 0xd61   : > { %2048 = vst.msk [vmem:[%s138_s4] sm:$0xff] %vm149_vm1, %v2047_v5 }
 0xd62 PF: > { %s12_s9 = sadd.s32 1, %s2511_s9  }
 0xd63   : > { %p9_p4 = scmp.ge.s32.totalorder %s12_s9, 4  }
 0xd65   :  { %11 = sbr.rel (!%p9_p4) target bundleno = 1 (0x1), region = 58 }

</bundles_post_ra>
